<compile_context>
chip_gen: v5e
topology: v5e:2x2
jax: 0.10.0
libtpu: 0.0.40
codegen_flags: <defaults>
</compile_context>

<pallas_src>
import functools

import jax
import jax.numpy as jnp
from jax.experimental import pallas as pl
from jax.experimental.pallas import tpu as pltpu

LANE = 128


def _round_up(n, m):
    return ((n + m - 1) // m) * m


def mlp_kernel(x_ref, w1_ref, b1_ref, w2_ref, b2_ref, o_ref):
    # x_ref:  (TB, IN)        batch tile (compute dtype, e.g. bf16)
    # w1_ref: (IN, HID)       fc1 weight, pre-transposed (compute dtype)
    # b1_ref: (1, HID)        f32
    # w2_ref: (HID, OUT_P)    fc2 weight, pre-transposed + lane-padded
    # b2_ref: (1, OUT_P)      f32 (padded cols are zero)
    # o_ref:  (TB, OUT_P)     f32, lane-dense store
    x = x_ref[...]
    h = jnp.dot(x, w1_ref[...], preferred_element_type=jnp.float32) + b1_ref[...]
    h = jnp.maximum(h, 0.0)                       # ReLU (f32 epilogue)
    # Dropout(p=0.4): identity at inference time.
    y = jnp.dot(h.astype(w2_ref.dtype), w2_ref[...],
                preferred_element_type=jnp.float32) + b2_ref[...]
    o_ref[...] = y.astype(o_ref.dtype)


def prepare_params(w1, b1, w2, b2, compute_dtype=jnp.bfloat16):
    """One-time prep of PyTorch-layout params.

    w1: (HID, IN), b1: (HID,), w2: (OUT, HID), b2: (OUT,)
    Returns (w1_t, b1_r, w2_tp, b2_p, out_features):
      w1_t : (IN, HID)     compute_dtype
      b1_r : (1, HID)      f32
      w2_tp: (HID, OUT_P)  compute_dtype, zero-padded to lane multiple
      b2_p : (1, OUT_P)    f32, zero-padded
    Zero padding of the OUT axis is exact: padded output columns are 0.
    """
    hid, in_f = w1.shape
    out_f = w2.shape[0]
    out_p = _round_up(out_f, LANE)

    w1_t = jnp.asarray(w1, compute_dtype).T                      # (IN, HID)
    b1_r = jnp.asarray(b1, jnp.float32).reshape(1, hid)
    w2_tp = jnp.zeros((hid, out_p), compute_dtype).at[:, :out_f].set(
        jnp.asarray(w2, compute_dtype).T)
    b2_p = jnp.zeros((1, out_p), jnp.float32).at[:, :out_f].set(
        jnp.asarray(b2, jnp.float32).reshape(1, out_f))
    return w1_t, b1_r, w2_tp, b2_p, out_f


@functools.partial(jax.jit, static_argnames=("compute_dtype",))
def simple_nn_forward(x, w1_t, b1_r, w2_tp, b2_p, compute_dtype=jnp.bfloat16):
    """Fused fc1->ReLU->dropout(eval)->fc2 forward.

    x: (B, IN). Returns a lane-padded (B, OUT_P) f32 array; columns beyond
    the true output width are exactly zero — consumers slice [:, :OUT].
    """
    B, IN = x.shape
    HID = w1_t.shape[1]
    OUT_P = w2_tp.shape[1]
    item = jnp.dtype(compute_dtype).itemsize

    xc = x.astype(compute_dtype)

    # Batch tiling: multiple of 8 sublanes, capped at 512 rows per step; pad
    # ragged batches with zero rows (discarded after the call).
    tb = min(512, _round_up(B, 8))
    B_pad = _round_up(B, tb)
    if B_pad != B:
        xc = jnp.zeros((B_pad, IN), xc.dtype).at[:B].set(xc)
    grid = (B_pad // tb,)

    # Explicit VMEM budget (double-buffered x/out, resident weights, f32
    # intermediates) with 2x headroom, clamped under v7x's 64 MiB physical.
    vmem_bytes = (2 * tb * IN * item                # x (double-buffered)
                  + 2 * tb * OUT_P * 4              # out f32 (double-buffered)
                  + 2 * (IN * HID + HID * OUT_P) * item   # weights
                  + 2 * (HID + OUT_P) * 4           # biases
                  + tb * HID * 4 + tb * OUT_P * 4)  # f32 h / y intermediates
    vmem_limit = int(min(max(2 * vmem_bytes, 4 << 20), 48 << 20))

    flops = 2 * B_pad * (IN * HID + HID * OUT_P)
    bytes_accessed = (item * (B_pad * IN + IN * HID + HID * OUT_P)
                      + 4 * (HID + OUT_P + B_pad * OUT_P))

    out_p = pl.pallas_call(
        mlp_kernel,
        out_shape=jax.ShapeDtypeStruct((B_pad, OUT_P), jnp.float32),
        grid=grid,
        in_specs=[
            pl.BlockSpec((tb, IN), lambda i: (i, 0)),       # x: tiled over batch
            pl.BlockSpec((IN, HID), lambda i: (0, 0)),      # w1^T: grid-invariant
            pl.BlockSpec((1, HID), lambda i: (0, 0)),       # b1
            pl.BlockSpec((HID, OUT_P), lambda i: (0, 0)),   # w2^T: grid-invariant
            pl.BlockSpec((1, OUT_P), lambda i: (0, 0)),     # b2
        ],
        out_specs=pl.BlockSpec((tb, OUT_P), lambda i: (i, 0)),
        compiler_params=pltpu.CompilerParams(
            dimension_semantics=("parallel",),
            vmem_limit_bytes=vmem_limit,
        ),
        cost_estimate=pl.CostEstimate(
            flops=flops, transcendentals=0, bytes_accessed=bytes_accessed),
    )(xc, w1_t, b1_r, w2_tp, b2_p)

    if B_pad != B:
        out_p = out_p[:B]
    return out_p


if __name__ == "__main__":
    # Small shapes consistent with the module: Linear(32 -> 64) -> Linear(64 -> 16)
    B, IN, HID, OUT = 16, 32, 64, 16

    key = jax.random.PRNGKey(0)
    kx, kw1, kb1, kw2, kb2 = jax.random.split(key, 5)

    x = jax.random.normal(kx, (B, IN), dtype=jnp.float32)

    # Deterministic parameter init (PyTorch-style uniform bounds for nn.Linear).
    bound1 = 1.0 / (IN ** 0.5)
    w1 = jax.random.uniform(kw1, (HID, IN), jnp.float32, -bound1, bound1)
    b1 = jax.random.uniform(kb1, (HID,), jnp.float32, -bound1, bound1)
    bound2 = 1.0 / (HID ** 0.5)
    w2 = jax.random.uniform(kw2, (OUT, HID), jnp.float32, -bound2, bound2)
    b2 = jax.random.uniform(kb2, (OUT,), jnp.float32, -bound2, bound2)

    # High-precision reference (same semantics as PyTorch eval forward).
    hp = jax.lax.Precision.HIGHEST
    ref = jnp.maximum(jnp.dot(x, w1.T, precision=hp) + b1, 0.0)
    ref = jnp.dot(ref, w2.T, precision=hp) + b2

    # --- bf16-operand hot path (recommended on v6e/v7x; also fine on v5e) ---
    params_bf16 = prepare_params(w1, b1, w2, b2, compute_dtype=jnp.bfloat16)
    w1_t, b1_r, w2_tp, b2_p, out_f = params_bf16
    out_pad = simple_nn_forward(x, w1_t, b1_r, w2_tp, b2_p,
                                compute_dtype=jnp.bfloat16)
    out_pad = jax.block_until_ready(out_pad)
    out = out_pad[:, :out_f]                       # consumer-side slice
    assert out.shape == (B, OUT)
    assert jnp.allclose(out, ref, atol=5e-2, rtol=5e-2)
    # Padded output columns must be exactly zero.
    assert jnp.all(out_pad[:, out_f:] == 0.0)

    # --- f32-operand reference path (numerics sanity check) ---
    params_f32 = prepare_params(w1, b1, w2, b2, compute_dtype=jnp.float32)
    w1f, b1f, w2f, b2f, _ = params_f32
    out_f32 = simple_nn_forward(x, w1f, b1f, w2f, b2f,
                                compute_dtype=jnp.float32)
    out_f32 = jax.block_until_ready(out_f32)[:, :out_f]
    assert jnp.allclose(out_f32, ref, atol=2e-2, rtol=2e-2)

    print("KERNEL_OK")
</pallas_src>

<mosaic_0001>
module attributes {stable_mosaic.version = 11 : i64} {
  func.func @mlp_kernel(%arg0: i32, %arg1: memref<16x32xbf16, #tpu.memory_space<vmem>>, %arg2: memref<32x64xbf16, #tpu.memory_space<vmem>>, %arg3: memref<1x64xf32, #tpu.memory_space<vmem>>, %arg4: memref<64x128xbf16, #tpu.memory_space<vmem>>, %arg5: memref<1x128xf32, #tpu.memory_space<vmem>>, %arg6: memref<16x128xf32, #tpu.memory_space<vmem>>) attributes {dimension_semantics = [#tpu.dimension_semantics<parallel>], iteration_bounds = array<i64: 1>, scalar_prefetch = 0 : i64, scratch_operands = 0 : i64, tpu.core_type = #tpu.core_type<tc>, window_params = [{transform_indices = @transform_0, window_bounds = array<i64: 16, 32>}, {pipeline_mode = #tpu.pipeline_mode<synchronous>, transform_indices = @transform_1, window_bounds = array<i64: 32, 64>}, {pipeline_mode = #tpu.pipeline_mode<synchronous>, transform_indices = @transform_2, window_bounds = array<i64: 1, 64>}, {pipeline_mode = #tpu.pipeline_mode<synchronous>, transform_indices = @transform_3, window_bounds = array<i64: 64, 128>}, {pipeline_mode = #tpu.pipeline_mode<synchronous>, transform_indices = @transform_4, window_bounds = array<i64: 1, 128>}, {transform_indices = @transform_5, window_bounds = array<i64: 16, 128>}]} {
    %c0 = arith.constant 0 : index
    %c0_0 = arith.constant 0 : index
    %0 = vector.load %arg1[%c0, %c0_0] : memref<16x32xbf16, #tpu.memory_space<vmem>>, vector<16x32xbf16>
    %c0_1 = arith.constant 0 : index
    %c0_2 = arith.constant 0 : index
    %1 = vector.load %arg2[%c0_1, %c0_2] : memref<32x64xbf16, #tpu.memory_space<vmem>>, vector<32x64xbf16>
    %cst = arith.constant dense<0.000000e+00> : vector<16x64xf32>
    %2 = tpu.matmul %0, %1, %cst {dimension_numbers = #tpu.dot_dimension_numbers<[1], [0], [0], [1], [0, 0, 1, 1], [], []>} : vector<16x32xbf16>, vector<32x64xbf16>, vector<16x64xf32> -> vector<16x64xf32>
    %c0_3 = arith.constant 0 : index
    %c0_4 = arith.constant 0 : index
    %3 = vector.load %arg3[%c0_3, %c0_4] : memref<1x64xf32, #tpu.memory_space<vmem>>, vector<1x64xf32>
    %4 = vector.broadcast %3 : vector<1x64xf32> to vector<16x64xf32>
    %5 = arith.addf %2, %4 : vector<16x64xf32>
    %cst_5 = arith.constant 0.000000e+00 : f32
    %6 = vector.broadcast %cst_5 : f32 to vector<16x64xf32>
    %7 = arith.maximumf %5, %6 : vector<16x64xf32>
    %8 = arith.truncf %7 : vector<16x64xf32> to vector<16x64xbf16>
    %c0_6 = arith.constant 0 : index
    %c0_7 = arith.constant 0 : index
    %9 = vector.load %arg4[%c0_6, %c0_7] : memref<64x128xbf16, #tpu.memory_space<vmem>>, vector<64x128xbf16>
    %cst_8 = arith.constant dense<0.000000e+00> : vector<16x128xf32>
    %10 = tpu.matmul %8, %9, %cst_8 {dimension_numbers = #tpu.dot_dimension_numbers<[1], [0], [0], [1], [0, 0, 1, 1], [], []>} : vector<16x64xbf16>, vector<64x128xbf16>, vector<16x128xf32> -> vector<16x128xf32>
    %c0_9 = arith.constant 0 : index
    %c0_10 = arith.constant 0 : index
    %11 = vector.load %arg5[%c0_9, %c0_10] : memref<1x128xf32, #tpu.memory_space<vmem>>, vector<1x128xf32>
    %12 = vector.broadcast %11 : vector<1x128xf32> to vector<16x128xf32>
    %13 = arith.addf %10, %12 : vector<16x128xf32>
    %c0_11 = arith.constant 0 : index
    %c0_12 = arith.constant 0 : index
    %14 = vector.load %arg6[%c0_11, %c0_12] : memref<16x128xf32, #tpu.memory_space<vmem>>, vector<16x128xf32>
    tpu.vector_store %arg6[%c0_11, %c0_12], %13 {strides = array<i32>} : memref<16x128xf32, #tpu.memory_space<vmem>>, vector<16x128xf32>,
    return
  }
  func.func @transform_0(%arg0: i32) -> (i32, i32) {
    %c0_i32 = arith.constant 0 : i32
    %c0_i32_0 = arith.constant 0 : i32
    return %arg0, %c0_i32 : i32, i32
  }
  func.func @transform_1(%arg0: i32) -> (i32, i32) {
    %c0_i32 = arith.constant 0 : i32
    %c0_i32_0 = arith.constant 0 : i32
    %c0_i32_1 = arith.constant 0 : i32
    return %c0_i32, %c0_i32_0 : i32, i32
  }
  func.func @transform_2(%arg0: i32) -> (i32, i32) {
    %c0_i32 = arith.constant 0 : i32
    %c0_i32_0 = arith.constant 0 : i32
    %c0_i32_1 = arith.constant 0 : i32
    return %c0_i32, %c0_i32_0 : i32, i32
  }
  func.func @transform_3(%arg0: i32) -> (i32, i32) {
    %c0_i32 = arith.constant 0 : i32
    %c0_i32_0 = arith.constant 0 : i32
    %c0_i32_1 = arith.constant 0 : i32
    return %c0_i32, %c0_i32_0 : i32, i32
  }
  func.func @transform_4(%arg0: i32) -> (i32, i32) {
    %c0_i32 = arith.constant 0 : i32
    %c0_i32_0 = arith.constant 0 : i32
    %c0_i32_1 = arith.constant 0 : i32
    return %c0_i32, %c0_i32_0 : i32, i32
  }
  func.func @transform_5(%arg0: i32) -> (i32, i32) {
    %c0_i32 = arith.constant 0 : i32
    %c0_i32_0 = arith.constant 0 : i32
    return %arg0, %c0_i32 : i32, i32
  }
}

</mosaic_0001>

<bundles_post_ra>
// kernel: simple_nn_forward.1
= control target key start
LH: loop header
LB: loop body
LE: loop exit
PB: predicated region body
PF: predicated region fallthrough
CT: control target
= control target key end

     0   :  { %10 = vsyncpa [#allocation3], 0  ;;  %s315_s0 = inlined_call_operand.vmem [shape: bf16[16,32], index: 0, kind: input, shape index: {}]   ;;  %s316_s1 = inlined_call_operand.vmem [shape: bf16[32,64], index: 1, kind: input, shape index: {}]   ;;  %s317_s2 = inlined_call_operand.vmem [shape: f32[1,64], index: 2, kind: input, shape index: {}]   ;;  %s318_s3 = inlined_call_operand.hbm [shape: bf16[64,128], index: 3, kind: input, shape index: {}]   ;;  %s319_s4 = inlined_call_operand.vmem [shape: f32[1,128], index: 4, kind: input, shape index: {}]   ;;  %s320_s5 = inlined_call_operand.hbm [shape: f32[16,128], index: 5, kind: output, shape index: {}]  }
   0x1   :  { %11 = vsyncpa [#allocation4], 0  ;;  %s22_s20 = sshll.u32 %s318_s3, 4  ;;  %s258_s21 = smov [#allocation2]   ;;  %s23_s20 = int_to_ptr.hbm [resolvable:$true] %s22_s20 }
   0x2   :  { %s24_s22 = sshll.u32 %s258_s21, 4  ;;  %s259_s23 = smov 64   ;;  %s25_s22 = int_to_ptr.vmem [resolvable:$true] %s24_s22 }
   0x3   :  { %s260_s24 = smov 4  }
   0x4   :  { %30 = dma.hbm_to_vmem [thread:$0]  %s23_s20, 512, %s25_s22, [#allocation3], %s259_s23, %s259_s23, %s260_s24  }
   0x5   :  { %254 = dma.done.wait [#allocation3], 512  }
   0x6   :  { %255 = vsyncadd [#allocation3], 4294966784  ;;  %v193_v0 = vld [vmem:[%s316_s1 + $0x8] sm:$0xff]  ;;  %v192_v1 = vld [vmem:[%s316_s1] sm:$0xff]  ;;  %vm65_vm0 = vcmask 261120   ;;  %vm122_vm1 = vcmask 523264  }
   0x7   :  { %75 = vmatpush.bf16.msra.mxu0 %v193_v0  ;;  %v191_v2 = vld [vmem:[%s315_s0] sm:$0xff]  ;;  %v197_v3 = vld [vmem:[#allocation2 + $0x18] sm:$0xff]  ;;  %v196_v4 = vld [vmem:[#allocation2 + $0x10] sm:$0xff]  ;;  %s261_s7 = smov [#allocation5]   ;;  %s262_s11 = smov 128  }
   0x8   :  { %130 = vmatpush.bf16.msra.mxu1 %v197_v3  ;;  %v195_v5 = vld [vmem:[#allocation2 + $0x8] sm:$0xff]  ;;  %v194_v6 = vld [vmem:[#allocation2] sm:$0xff]  ;;  %s146_s8 = sshll.u32 %s261_s7, 4  ;;  %s263_s12 = smov 8   ;;  %s147_s8 = int_to_ptr.vmem [resolvable:$true] %s146_s8 }
   0x9   :  { %v204_v8 = vld [vmem:[%s317_s2] ss:$0 sm:$0xff]  ;;  %s148_s2 = sshll.u32 %s320_s5, 4  ;;  %s149_s2 = int_to_ptr.hbm [resolvable:$true] %s148_s2 }
   0xa   :  { %v205_v15 = vld [vmem:[%s319_s4] ss:$0 sm:$0xff] }
   0xb   :  { %76 = vmatpush.bf16.msra.mxu0 %v192_v1 }
   0xc   :  { %131 = vmatpush.bf16.msra.mxu1 %v196_v4 }
   0xe   :  { %173 = vmatmul.msk.bf16.vlgmr.msra.gmra.mxu0 %vm65_vm0, %v191_v2 }
  0x10   :  { %132 = vmatpush.bf16.msra.mxu1 %v195_v5 }
  0x14   :  { %133 = vmatpush.bf16.msra.mxu1 %v194_v6 }
  0x8b   :  { %v78_v7 = vpop.f32.mrf.mxu0 }
  0x8c   :  { %v79_v9 = vadd.f32 %v204_v8, %v78_v7 }
  0x8e   :  { %v83_v12 = vmax.f32 %v79_v9, 0.0 }
  0x93   :  { %v80_v10 = vpop.f32.mrf.mxu0 }
  0x94   :  { %v81_v11 = vadd.f32 %v204_v8, %v80_v10 }
  0x96   :  { %v84_v13 = vmax.f32 %v81_v11, 0.0 }
  0x98   :  { %v85_v14 = vpack.c.bf16 %v84_v13, %v83_v12 }
  0x9a   :  { %190 = vmatmul.msk.bf16.vlgmr.msra.gmra.mxu1 %vm122_vm1, %v85_v14 }
 0x117   :  { %v135_v16 = vpop.f32.mrf.mxu1 }
 0x118   :  { %v136_v17 = vadd.f32 %v205_v15, %v135_v16 }
 0x11a   :  { %140 = vst [vmem:[#allocation5] sm:$0xff] %v136_v17 }
 0x11f   :  { %v137_v18 = vpop.f32.mrf.mxu1 }
 0x120   :  { %v138_v19 = vadd.f32 %v205_v15, %v137_v18 }
 0x122   :  { %141 = vst [vmem:[#allocation5 + $0x8] sm:$0xff] %v138_v19 }
 0x123   :  { %154 = dma.vmem_to_hbm [thread:$0]  %s147_s8, 256, %s149_s2, [#allocation4], %s262_s11, %s262_s11, %s263_s12  }
 0x124   :  { %256 = dma.done.wait [#allocation4], 256  }
 0x125   :  { %257 = vsyncadd [#allocation4], 4294967040 }
 0x126   :  { %159 = vsyncpa [#allocation3], 1 }
 0x127   :  { %160 = vsyncpa [#allocation4], 1 }

</bundles_post_ra>
